<compile_context>
chip_gen: v7x
topology: tpu7x:2x2x1
jax: 0.10.0
libtpu: 0.0.40
codegen_flags: <defaults>
</compile_context>

<pallas_src>
import jax
import jax.numpy as jnp
from jax.experimental import pallas as pl
from jax.experimental.pallas import tpu as pltpu


def _round_up(x, m):
    return (x + m - 1) // m * m


# ----------------------------------------------------------------------------
# Generic tiled (M,K)@(K,N) + bias kernel (used for input projection and the
# output Linear).  Rows are tiled over a fully parallel grid axis.
# ----------------------------------------------------------------------------
def _matmul_bias_kernel(x_ref, w_ref, b_ref, o_ref):
    a = x_ref[...].astype(w_ref.dtype)          # bf16 lhs for native MXU
    o_ref[...] = (jnp.dot(a, w_ref[...], preferred_element_type=jnp.float32)
                  + b_ref[...]).astype(o_ref.dtype)


def _matmul_bias(x2d, w, b, *, tm_max=512):
    """x2d: (M, K) f32, w: (K, N) bf16, b: (1, N) f32 -> (M, N) f32."""
    M, K = x2d.shape
    N = w.shape[1]
    tm = min(tm_max, _round_up(M, 8))
    Mp = _round_up(M, tm)
    if Mp != M:
        x2d = jnp.pad(x2d, ((0, Mp - M), (0, 0)))
    out = pl.pallas_call(
        _matmul_bias_kernel,
        out_shape=jax.ShapeDtypeStruct((Mp, N), jnp.float32),
        grid_spec=pltpu.PrefetchScalarGridSpec(
            num_scalar_prefetch=0,
            grid=(Mp // tm,),
            in_specs=[
                pl.BlockSpec((tm, K), lambda i: (i, 0)),
                pl.BlockSpec((K, N), lambda i: (0, 0)),
                pl.BlockSpec((1, N), lambda i: (0, 0)),
            ],
            out_specs=pl.BlockSpec((tm, N), lambda i: (i, 0)),
        ),
        compiler_params=pltpu.CompilerParams(
            dimension_semantics=("parallel",)),
    )(x2d, w, b)
    return out[:M]


# ----------------------------------------------------------------------------
# LSTM recurrence kernel.  One grid step == T_BLOCK time steps.
#   gx_ref    : (T, Bp, 4Hp)  precomputed x@W_ih + bias block for these steps
#   whh_ref   : (Hp, 4Hp)     hidden->gates weights (transposed, bf16)
#   h_out_ref : (T, Bp, Hp)   hidden-state slab output (lane-dense)
#   h_scr/c_scr : (Bp, Hp) f32 VMEM scratch, persists across grid steps
# ----------------------------------------------------------------------------
def _lstm_recurrence_kernel(gx_ref, whh_ref, h_out_ref, h_scr, c_scr):
    Hp = h_scr.shape[-1]
    T = gx_ref.shape[0]

    # init_hidden() -> zeros, only at the first time block.
    @pl.when(pl.program_id(0) == 0)
    def _():
        h_scr[...] = jnp.zeros_like(h_scr)
        c_scr[...] = jnp.zeros_like(c_scr)

    whh = whh_ref[...]                           # loop-invariant bf16 weights

    def step(s, carry):
        h, c = carry
        # Only the recurrent matmul remains on the serial critical path.
        gates = gx_ref[s] + jnp.dot(h.astype(whh.dtype), whh,
                                    preferred_element_type=jnp.float32)
        # PyTorch gate ordering: input, forget, cell(g), output.
        # Slices are 128-lane aligned because each gate occupies Hp columns.
        i_g = jax.nn.sigmoid(gates[:, 0 * Hp:1 * Hp])
        f_g = jax.nn.sigmoid(gates[:, 1 * Hp:2 * Hp])
        g_g = jnp.tanh(gates[:, 2 * Hp:3 * Hp])
        o_g = jax.nn.sigmoid(gates[:, 3 * Hp:4 * Hp])
        c_n = f_g * c + i_g * g_g
        h_n = o_g * jnp.tanh(c_n)
        h_out_ref[s] = h_n.astype(h_out_ref.dtype)
        return (h_n, c_n)

    h_last, c_last = jax.lax.fori_loop(
        0, T, step, (h_scr[...], c_scr[...]), unroll=True)
    h_scr[...] = h_last
    c_scr[...] = c_last


def _pick_time_block(S, Bp, Hp, budget_bytes=2 << 20):
    """Largest divisor of S whose per-block VMEM footprint fits the budget."""
    per_step = Bp * (4 * Hp + Hp) * 4            # gx block + h block, f32
    t = max(1, min(S, budget_bytes // max(per_step, 1)))
    while S % t:
        t -= 1
    return t


def rnn_forward(x, w_ih, w_hh, b_ih, b_hh, w_out, b_out):
    """x: (S, B, I) f32.  Returns (S, B, O) f32 (== Linear(LSTM(x)))."""
    S, B, I = x.shape
    H = w_hh.shape[1]
    O = w_out.shape[0]

    Hp = _round_up(H, 128)        # lane-align each gate + lane-dense h slab
    Bp = _round_up(B, 8)          # sublane-align the batch

    # ---- glue: per-gate hidden padding, transpose, bf16 cast, fused bias ----
    w_ih_p = jnp.pad(w_ih.reshape(4, H, I),
                     ((0, 0), (0, Hp - H), (0, 0))).reshape(4 * Hp, I)
    w_hh_p = jnp.pad(w_hh.reshape(4, H, H),
                     ((0, 0), (0, Hp - H), (0, Hp - H))).reshape(4 * Hp, Hp)
    bias_p = jnp.pad((b_ih + b_hh).reshape(4, H),
                     ((0, 0), (0, Hp - H))).reshape(1, 4 * Hp).astype(jnp.float32)
    w_out_p = jnp.pad(w_out, ((0, 0), (0, Hp - H)))          # (O, Hp)

    wih_t = w_ih_p.T.astype(jnp.bfloat16)        # (I, 4Hp)
    whh_t = w_hh_p.T.astype(jnp.bfloat16)        # (Hp, 4Hp)
    wout_t = w_out_p.T.astype(jnp.bfloat16)      # (Hp, O)
    bout = b_out.reshape(1, O).astype(jnp.float32)

    x_p = jnp.pad(x, ((0, 0), (0, Bp - B), (0, 0)))          # (S, Bp, I)

    # ---- 1) input projection for all time steps (fully parallel matmul) ----
    gx = _matmul_bias(x_p.reshape(S * Bp, I), wih_t, bias_p)
    gx = gx.reshape(S, Bp, 4 * Hp)

    # ---- 2) recurrence (sequential over time blocks) -----------------------
    t_block = _pick_time_block(S, Bp, Hp)
    # TODO(synk): for large batch, add a leading "parallel" batch grid axis
    # (per-core h/c scratch) to use both v7x TensorCores.
    h_all = pl.pallas_call(
        _lstm_recurrence_kernel,
        out_shape=jax.ShapeDtypeStruct((S, Bp, Hp), jnp.float32),
        grid_spec=pltpu.PrefetchScalarGridSpec(
            num_scalar_prefetch=0,
            grid=(S // t_block,),
            in_specs=[
                pl.BlockSpec((t_block, Bp, 4 * Hp), lambda t: (t, 0, 0)),
                pl.BlockSpec((Hp, 4 * Hp), lambda t: (0, 0)),
            ],
            out_specs=pl.BlockSpec((t_block, Bp, Hp), lambda t: (t, 0, 0)),
            scratch_shapes=[
                pltpu.VMEM((Bp, Hp), jnp.float32),   # h state
                pltpu.VMEM((Bp, Hp), jnp.float32),   # c state
            ],
        ),
        compiler_params=pltpu.CompilerParams(
            # Time recurrence carried through scratch -> must stay sequential.
            dimension_semantics=("arbitrary",)),
    )(gx, whh_t)

    # ---- 3) output Linear over the whole h slab (fully parallel matmul) ----
    out_flat = _matmul_bias(h_all.reshape(S * Bp, Hp), wout_t, bout)
    return out_flat.reshape(S, Bp, O)[:, :B, :]


def rnn_forward_ref(x, w_ih, w_hh, b_ih, b_hh, w_out, b_out):
    """Pure-JAX f32 reference matching nn.LSTM + nn.Linear semantics."""
    S, B, I = x.shape
    H = w_hh.shape[1]

    def step(carry, x_t):
        h, c = carry
        gates = x_t @ w_ih.T + h @ w_hh.T + b_ih + b_hh
        i_g = jax.nn.sigmoid(gates[:, 0 * H:1 * H])
        f_g = jax.nn.sigmoid(gates[:, 1 * H:2 * H])
        g_g = jnp.tanh(gates[:, 2 * H:3 * H])
        o_g = jax.nn.sigmoid(gates[:, 3 * H:4 * H])
        c_n = f_g * c + i_g * g_g
        h_n = o_g * jnp.tanh(c_n)
        return (h_n, c_n), h_n

    h0 = jnp.zeros((B, H), jnp.float32)
    c0 = jnp.zeros((B, H), jnp.float32)
    _, hs = jax.lax.scan(step, (h0, c0), x)
    return hs @ w_out.T + b_out


if __name__ == "__main__":
    seq_len, batch, input_size, hidden_size, output_size = 8, 2, 8, 32, 16

    key = jax.random.PRNGKey(0)
    ks = jax.random.split(key, 7)
    scale = 1.0 / jnp.sqrt(hidden_size)

    x = jax.random.normal(ks[0], (seq_len, batch, input_size), jnp.float32)
    w_ih = jax.random.uniform(ks[1], (4 * hidden_size, input_size),
                              jnp.float32, -scale, scale)
    w_hh = jax.random.uniform(ks[2], (4 * hidden_size, hidden_size),
                              jnp.float32, -scale, scale)
    b_ih = jax.random.uniform(ks[3], (4 * hidden_size,),
                              jnp.float32, -scale, scale)
    b_hh = jax.random.uniform(ks[4], (4 * hidden_size,),
                              jnp.float32, -scale, scale)
    w_out = jax.random.uniform(ks[5], (output_size, hidden_size),
                               jnp.float32, -scale, scale)
    b_out = jax.random.uniform(ks[6], (output_size,),
                               jnp.float32, -scale, scale)

    out = rnn_forward(x, w_ih, w_hh, b_ih, b_hh, w_out, b_out)
    out = jax.block_until_ready(out)

    ref = rnn_forward_ref(x, w_ih, w_hh, b_ih, b_hh, w_out, b_out)
    assert out.shape == (seq_len, batch, output_size)
    # bf16 MXU inputs (f32 accumulation / f32 state) -> bf16-appropriate tol.
    assert jnp.allclose(out, ref, atol=3e-2, rtol=3e-2), "mismatch vs reference"

    print("KERNEL_OK")
</pallas_src>

<mosaic_0001>
module attributes {stable_mosaic.version = 11 : i64} {
  func.func @_matmul_bias_kernel(%arg0: i32, %arg1: memref<64x8xf32, #tpu.memory_space<vmem>>, %arg2: memref<8x512xbf16, #tpu.memory_space<vmem>>, %arg3: memref<1x512xf32, #tpu.memory_space<vmem>>, %arg4: memref<64x512xf32, #tpu.memory_space<vmem>>) attributes {dimension_semantics = [#tpu.dimension_semantics<parallel>], iteration_bounds = array<i64: 1>, scalar_prefetch = 0 : i64, scratch_operands = 0 : i64, tpu.core_type = #tpu.core_type<tc>, window_params = [{transform_indices = @transform_0, window_bounds = array<i64: 64, 8>}, {pipeline_mode = #tpu.pipeline_mode<synchronous>, transform_indices = @transform_1, window_bounds = array<i64: 8, 512>}, {pipeline_mode = #tpu.pipeline_mode<synchronous>, transform_indices = @transform_2, window_bounds = array<i64: 1, 512>}, {transform_indices = @transform_3, window_bounds = array<i64: 64, 512>}]} {
    %c0 = arith.constant 0 : index
    %c0_0 = arith.constant 0 : index
    %0 = vector.load %arg1[%c0, %c0_0] : memref<64x8xf32, #tpu.memory_space<vmem>>, vector<64x8xf32>
    %1 = arith.truncf %0 : vector<64x8xf32> to vector<64x8xbf16>
    %c0_1 = arith.constant 0 : index
    %c0_2 = arith.constant 0 : index
    %2 = vector.load %arg2[%c0_1, %c0_2] : memref<8x512xbf16, #tpu.memory_space<vmem>>, vector<8x512xbf16>
    %cst = arith.constant dense<0.000000e+00> : vector<64x512xf32>
    %3 = tpu.matmul %1, %2, %cst {dimension_numbers = #tpu.dot_dimension_numbers<[1], [0], [0], [1], [0, 0, 1, 1], [], []>} : vector<64x8xbf16>, vector<8x512xbf16>, vector<64x512xf32> -> vector<64x512xf32>
    %c0_3 = arith.constant 0 : index
    %c0_4 = arith.constant 0 : index
    %4 = vector.load %arg3[%c0_3, %c0_4] : memref<1x512xf32, #tpu.memory_space<vmem>>, vector<1x512xf32>
    %5 = vector.broadcast %4 : vector<1x512xf32> to vector<64x512xf32>
    %6 = arith.addf %3, %5 : vector<64x512xf32>
    %c0_5 = arith.constant 0 : index
    %c0_6 = arith.constant 0 : index
    %7 = vector.load %arg4[%c0_5, %c0_6] : memref<64x512xf32, #tpu.memory_space<vmem>>, vector<64x512xf32>
    tpu.vector_store %arg4[%c0_5, %c0_6], %6 {strides = array<i32>} : memref<64x512xf32, #tpu.memory_space<vmem>>, vector<64x512xf32>,
    return
  }
  func.func @transform_0(%arg0: i32) -> (i32, i32) {
    %c0_i32 = arith.constant 0 : i32
    %c0_i32_0 = arith.constant 0 : i32
    return %arg0, %c0_i32 : i32, i32
  }
  func.func @transform_1(%arg0: i32) -> (i32, i32) {
    %c0_i32 = arith.constant 0 : i32
    %c0_i32_0 = arith.constant 0 : i32
    %c0_i32_1 = arith.constant 0 : i32
    return %c0_i32, %c0_i32_0 : i32, i32
  }
  func.func @transform_2(%arg0: i32) -> (i32, i32) {
    %c0_i32 = arith.constant 0 : i32
    %c0_i32_0 = arith.constant 0 : i32
    %c0_i32_1 = arith.constant 0 : i32
    return %c0_i32, %c0_i32_0 : i32, i32
  }
  func.func @transform_3(%arg0: i32) -> (i32, i32) {
    %c0_i32 = arith.constant 0 : i32
    %c0_i32_0 = arith.constant 0 : i32
    return %arg0, %c0_i32 : i32, i32
  }
}

</mosaic_0001>

<bundles_post_ra>
// kernel: tpu_custom_call.1
= control target key start
LH: loop header
LB: loop body
LE: loop exit
PB: predicated region body
PF: predicated region fallthrough
CT: control target
= control target key end

     0   :  { %vm75_vm0 = vcmask 1043456   ;;  %v328_v7 = vmov 0   ;;  %vm62_vm1 = vcmask 64512   ;;  %s445_s0 = inlined_call_operand.vmem [shape: f32[64,8], index: 0, kind: input, shape index: {}]   ;;  %s446_s1 = inlined_call_operand.vmem [shape: bf16[8,512], index: 1, kind: input, shape index: {}]   ;;  %s447_s2 = inlined_call_operand.vmem [shape: f32[1,512], index: 2, kind: input, shape index: {}]   ;;  %s448_s3 = inlined_call_operand.hbm [shape: f32[64,512], index: 3, kind: output, shape index: {}]  }
   0x1   :  { %v28_v0 = vld [vmem:[%s446_s1] sm:$0xff]  ;;  %v29_v1 = vld [vmem:[%s446_s1 + $0x8] sm:$0xff]  ;;  %120 = vmatprep.mubr.bf16.mxu0 %v328_v7  ;;  %193 = vmatprep.mubr.bf16.mxu1 %v328_v7 }
   0x2   :  { %v16_v2 = vld [vmem:[%s445_s0] sm:$0xff]  ;;  %v283_v3 = vcombine.high %v28_v0, %v28_v0  ;;  %v285_v4 = vcombine.high %v29_v1, %v29_v1  ;;  %v282_v5 = vcombine.low %v28_v0, %v28_v0  ;;  %v284_v6 = vcombine.low %v29_v1, %v29_v1  ;;  %v17_v8 = vld [vmem:[%s445_s0 + $0x8] sm:$0xff] }
   0x3   :  { %v24_v11 = vpack.c.bf16 %v17_v8, %v16_v2 }
   0x4   :  { %286 = vmatprep.subr.msk.bf16.mxu0 %vm75_vm0, %v283_v3  ;;  %291 = vmatprep.subr.msk.bf16.mxu1 %vm75_vm0, %v285_v4  ;;  %v77_v9 = vsel %vm75_vm0, %v282_v5, 0  ;;  %v83_v10 = vsel %vm75_vm0, %v284_v6, 0 }
   0x5   :  { %89 = vmatpush1.bf16.msra.mxu0 %v77_v9  ;;  %162 = vmatpush1.bf16.msra.mxu1 %v83_v10 }
   0x6   :  { %8 = vsyncpa [#allocation3], 0  ;;  %v18_v12 = vld [vmem:[%s445_s0 + $0x10] sm:$0xff]  ;;  %v19_v13 = vld [vmem:[%s445_s0 + $0x18] sm:$0xff]  ;;  %v32_v21 = vlaneseq }
   0x7   :  { %v25_v14 = vpack.c.bf16 %v19_v13, %v18_v12  ;;  %v20_v15 = vld [vmem:[%s445_s0 + $0x20] sm:$0xff]  ;;  %v21_v16 = vld [vmem:[%s445_s0 + $0x28] sm:$0xff]  ;;  %v22_v18 = vld [vmem:[%s445_s0 + $0x30] sm:$0xff] }
   0x8   :  { %287 = vmatmul.mubr.msk.bf16.vlgmr.msra.gmra.mrb[0].mxu0 %vm62_vm1, %v24_v11  ;;  %292 = vmatmul.mubr.msk.bf16.vlgmr.msra.gmra.mrb[0].mxu1 %vm62_vm1, %v24_v11  ;;  %v26_v17 = vpack.c.bf16 %v21_v16, %v20_v15  ;;  %v23_v19 = vld [vmem:[%s445_s0 + $0x38] sm:$0xff]  ;;  %v33_v22 = vshrl.u32 %v32_v21, 7  ;;  %v30_v25 = vld [vmem:[%s447_s2] sm:$0xf]  ;;  %s329_s0 = smov [#allocation2]  }
   0x9   :  { %130 = vmatprep.mubr.bf16.mxu0 %v328_v7  ;;  %203 = vmatprep.mubr.bf16.mxu1 %v328_v7  ;;  %v27_v20 = vpack.c.bf16 %v23_v19, %v22_v18  ;;  %s271_s2 = sshll.u32 %s329_s0, 4  ;;  %s272_s2 = int_to_ptr.vmem [resolvable:$true] %s271_s2 }
   0xa   :  { %v34_v23 = vsub.s32 0, %v33_v22  ;;  %v42_v24 = vsub.s32 2, %v33_v22  ;;  %v38_v26 = vsub.s32 1, %v33_v22  ;;  %v46_v27 = vsub.s32 3, %v33_v22  ;;  %s304_s6 = scalar_lea.vmem %s272_s2, 4096  ;;  %p309_p1 = scmp.lt.s32.totalorder %s272_s2, %s272_s2 }
   0xb   :  { %p305_p0 = scmp.ne.s32.totalorder %s272_s2, %s304_s6  ;;  %p310_p2 = scmp.lt.s32.totalorder %s304_s6, %s304_s6 }
   0xc   :  { %v393_v28 = vrot.slane %v30_v25, %v34_v23  ;;  %v395_v29 = vrot.slane %v30_v25, %v42_v24  ;;  %v397_v30 = vrot.slane %v30_v25, %v38_v26  ;;  %v399_v31 = vrot.slane %v30_v25, %v46_v27 }
   0xd   :  { %p311_p3 = por %p310_p2, %p309_p1 }
   0xf   :  { %p312_p4 = pnand %p311_p3, %p305_p0 }
  0x10   :  { %288 = vmatmul.mubr.msk.bf16.gmra.mrb[4].mxu0 %vm62_vm1, %v25_v14  ;;  %293 = vmatmul.mubr.msk.bf16.gmra.mrb[4].mxu1 %vm62_vm1, %v25_v14 }
  0x11   :  { %140 = vmatprep.mubr.bf16.mxu0 %v328_v7  ;;  %213 = vmatprep.mubr.bf16.mxu1 %v328_v7 }
  0x18   :  { %289 = vmatmul.mubr.msk.bf16.gmra.mrb[8].mxu0 %vm62_vm1, %v26_v17  ;;  %294 = vmatmul.mubr.msk.bf16.gmra.mrb[8].mxu1 %vm62_vm1, %v26_v17 }
  0x19   :  { %150 = vmatprep.mubr.bf16.mxu0 %v328_v7  ;;  %223 = vmatprep.mubr.bf16.mxu1 %v328_v7 }
  0x20   :  { %290 = vmatmul.mubr.msk.bf16.gmra.mrb[12].mxu0 %vm62_vm1, %v27_v20  ;;  %295 = vmatmul.mubr.msk.bf16.gmra.mrb[12].mxu1 %vm62_vm1, %v27_v20 }
  0xdb   :  { %v122_v32 = vpop.f32.mrb[0].mxu0  ;;  %v195_v33 = vpop.f32.mrb[0].mxu1 }
  0xdc   :  { %v123_v34 = vadd.f32 %v122_v32, %v393_v28  ;;  %v196_v35 = vadd.f32 %v195_v33, %v395_v29  ;;  %v124_v36 = vpop.f32.mrb[1].mxu0  ;;  %v197_v37 = vpop.f32.mrb[1].mxu1 }
  0xdd   :  { %v125_v38 = vadd.f32 %v124_v36, %v397_v30  ;;  %v198_v39 = vadd.f32 %v197_v37, %v399_v31  ;;  %v126_v40 = vpop.f32.mrb[2].mxu0  ;;  %v199_v41 = vpop.f32.mrb[2].mxu1 }
  0xde   :  { %234 = vst [vmem:[#allocation2] sm:$0xff] %v123_v34  ;;  %236 = vst [vmem:[#allocation2 + $0x10] sm:$0xff] %v196_v35  ;;  %v127_v42 = vadd.f32 %v126_v40, %v393_v28  ;;  %v200_v43 = vadd.f32 %v199_v41, %v395_v29  ;;  %v128_v44 = vpop.f32.mrb[3].mxu0  ;;  %v201_v45 = vpop.f32.mrb[3].mxu1 }
  0xdf   :  { %235 = vst [vmem:[#allocation2 + $0x8] sm:$0xff] %v125_v38  ;;  %237 = vst [vmem:[#allocation2 + $0x18] sm:$0xff] %v198_v39  ;;  %v129_v46 = vadd.f32 %v128_v44, %v397_v30  ;;  %v202_v47 = vadd.f32 %v201_v45, %v399_v31 }
  0xe0   :  { %238 = vst [vmem:[#allocation2 + $0x20] sm:$0xff] %v127_v42  ;;  %240 = vst [vmem:[#allocation2 + $0x30] sm:$0xff] %v200_v43 }
  0xe1   :  { %239 = vst [vmem:[#allocation2 + $0x28] sm:$0xff] %v129_v46  ;;  %241 = vst [vmem:[#allocation2 + $0x38] sm:$0xff] %v202_v47 }
  0xe3   :  { %v132_v48 = vpop.f32.mrb[4].mxu0  ;;  %v205_v49 = vpop.f32.mrb[4].mxu1 }
  0xe4   :  { %v133_v50 = vadd.f32 %v132_v48, %v393_v28  ;;  %v206_v51 = vadd.f32 %v205_v49, %v395_v29  ;;  %v134_v52 = vpop.f32.mrb[5].mxu0  ;;  %v207_v53 = vpop.f32.mrb[5].mxu1 }
  0xe5   :  { %v135_v54 = vadd.f32 %v134_v52, %v397_v30  ;;  %v208_v55 = vadd.f32 %v207_v53, %v399_v31  ;;  %v136_v56 = vpop.f32.mrb[6].mxu0  ;;  %v209_v57 = vpop.f32.mrb[6].mxu1 }
  0xe6   :  { %242 = vst [vmem:[#allocation2 + $0x40] sm:$0xff] %v133_v50  ;;  %244 = vst [vmem:[#allocation2 + $0x50] sm:$0xff] %v206_v51  ;;  %v137_v58 = vadd.f32 %v136_v56, %v393_v28  ;;  %v210_v59 = vadd.f32 %v209_v57, %v395_v29  ;;  %v138_v60 = vpop.f32.mrb[7].mxu0  ;;  %v211_v61 = vpop.f32.mrb[7].mxu1 }
  0xe7   :  { %243 = vst [vmem:[#allocation2 + $0x48] sm:$0xff] %v135_v54  ;;  %245 = vst [vmem:[#allocation2 + $0x58] sm:$0xff] %v208_v55  ;;  %v139_v62 = vadd.f32 %v138_v60, %v397_v30  ;;  %v212_v63 = vadd.f32 %v211_v61, %v399_v31 }
  0xe8   :  { %246 = vst [vmem:[#allocation2 + $0x60] sm:$0xff] %v137_v58  ;;  %248 = vst [vmem:[#allocation2 + $0x70] sm:$0xff] %v210_v59 }
  0xe9   :  { %247 = vst [vmem:[#allocation2 + $0x68] sm:$0xff] %v139_v62  ;;  %249 = vst [vmem:[#allocation2 + $0x78] sm:$0xff] %v212_v63 }
  0xeb   :  { %v142_v0 = vpop.f32.mrb[8].mxu0  ;;  %v215_v1 = vpop.f32.mrb[8].mxu1 }
  0xec   :  { %v143_v2 = vadd.f32 %v142_v0, %v393_v28  ;;  %v216_v3 = vadd.f32 %v215_v1, %v395_v29  ;;  %v144_v4 = vpop.f32.mrb[9].mxu0  ;;  %v217_v5 = vpop.f32.mrb[9].mxu1 }
  0xed   :  { %v145_v6 = vadd.f32 %v144_v4, %v397_v30  ;;  %v218_v7 = vadd.f32 %v217_v5, %v399_v31  ;;  %v146_v8 = vpop.f32.mrb[10].mxu0  ;;  %v219_v9 = vpop.f32.mrb[10].mxu1 }
  0xee   :  { %250 = vst [vmem:[#allocation2 + $0x80] sm:$0xff] %v143_v2  ;;  %252 = vst [vmem:[#allocation2 + $0x90] sm:$0xff] %v216_v3  ;;  %v147_v10 = vadd.f32 %v146_v8, %v393_v28  ;;  %v220_v11 = vadd.f32 %v219_v9, %v395_v29  ;;  %v148_v12 = vpop.f32.mrb[11].mxu0  ;;  %v221_v13 = vpop.f32.mrb[11].mxu1 }
  0xef   :  { %251 = vst [vmem:[#allocation2 + $0x88] sm:$0xff] %v145_v6  ;;  %253 = vst [vmem:[#allocation2 + $0x98] sm:$0xff] %v218_v7  ;;  %v149_v14 = vadd.f32 %v148_v12, %v397_v30  ;;  %v222_v15 = vadd.f32 %v221_v13, %v399_v31 }
  0xf0   :  { %254 = vst [vmem:[#allocation2 + $0xa0] sm:$0xff] %v147_v10  ;;  %256 = vst [vmem:[#allocation2 + $0xb0] sm:$0xff] %v220_v11 }
  0xf1   :  { %255 = vst [vmem:[#allocation2 + $0xa8] sm:$0xff] %v149_v14  ;;  %257 = vst [vmem:[#allocation2 + $0xb8] sm:$0xff] %v222_v15 }
  0xf3   :  { %v152_v16 = vpop.f32.mrb[12].mxu0  ;;  %v225_v17 = vpop.f32.mrb[12].mxu1 }
  0xf4   :  { %v153_v18 = vadd.f32 %v152_v16, %v393_v28  ;;  %v226_v19 = vadd.f32 %v225_v17, %v395_v29  ;;  %v154_v20 = vpop.f32.mrb[13].mxu0  ;;  %v227_v21 = vpop.f32.mrb[13].mxu1 }
  0xf5   :  { %v155_v22 = vadd.f32 %v154_v20, %v397_v30  ;;  %v228_v23 = vadd.f32 %v227_v21, %v399_v31  ;;  %v156_v24 = vpop.f32.mrb[14].mxu0  ;;  %v229_v25 = vpop.f32.mrb[14].mxu1 }
  0xf6   :  { %258 = vst [vmem:[#allocation2 + $0xc0] sm:$0xff] %v153_v18  ;;  %260 = vst [vmem:[#allocation2 + $0xd0] sm:$0xff] %v226_v19  ;;  %v157_v26 = vadd.f32 %v156_v24, %v393_v28  ;;  %v230_v27 = vadd.f32 %v229_v25, %v395_v29  ;;  %v158_v32 = vpop.f32.mrb[15].mxu0  ;;  %v231_v33 = vpop.f32.mrb[15].mxu1 }
  0xf7   :  { %259 = vst [vmem:[#allocation2 + $0xc8] sm:$0xff] %v155_v22  ;;  %261 = vst [vmem:[#allocation2 + $0xd8] sm:$0xff] %v228_v23  ;;  %v159_v34 = vadd.f32 %v158_v32, %v397_v30  ;;  %v232_v35 = vadd.f32 %v231_v33, %v399_v31 }
  0xf8   :  { %262 = vst [vmem:[#allocation2 + $0xe0] sm:$0xff] %v157_v26  ;;  %264 = vst [vmem:[#allocation2 + $0xf0] sm:$0xff] %v230_v27 }
  0xf9   :  { %263 = vst [vmem:[#allocation2 + $0xe8] sm:$0xff] %v159_v34  ;;  %265 = vst [vmem:[#allocation2 + $0xf8] sm:$0xff] %v232_v35 }
  0xfa   :  { %315 = shalt.err (!%p312_p4)
}
  0xfb   :  { %s316_s9 = scalar_lea.hbm %s448_s3, 4096 }
  0xfc   :  { %p317_p5 = scmp.ne.s32.totalorder %s448_s3, %s316_s9  ;;  %p320_p6 = scmp.lt.u32.totalorder %s316_s9, %s448_s3 }
  0xfe   :  { %p322_p7 = pnand %p320_p6, %p317_p5 }
 0x100   :  { %325 = shalt.err (!%p322_p7)
}
 0x101   :  { %s330_s14 = smov 512   ;;  %s331_s15 = smov 32  }
 0x102   :  { %277 = dma.vmem_to_hbm [thread:$0]  %s272_s2, 4096, %s448_s3, [#allocation3], %s330_s14, %s330_s14, %s331_s15  }
 0x103   :  { %326 = dma.done.wait [#allocation3], 4096  }
 0x104   :  { %327 = vsyncadd [#allocation3], 4294963200 }
 0x105   :  { %281 = vsyncpa [#allocation3], 1 }

</bundles_post_ra>
